<compile_context>
chip_gen: v6e
topology: v6e:2x2x1
jax: 0.10.0
libtpu: 0.0.40
codegen_flags: <defaults>
</compile_context>

<pallas_src>
import functools

import jax
import jax.numpy as jnp
from jax.experimental import pallas as pl
from jax.experimental.pallas import tpu as pltpu


def _round_up(v, m):
    return ((v + m - 1) // m) * m


def _gated_combination_kernel(x_ref, lit_ref, wx_ref, wl_ref, b_ref, o_ref, *, entity_dim):
    """One grid step: (tb, E) + (tb, L) f32 tiles -> (tb, E) output tile."""
    x_f32 = x_ref[...]                       # (tb, E) f32 -- residual path stays exact f32
    cd = wx_ref.dtype                        # compute dtype of the packed weights (bf16/f32)

    # Fused matmul: pre[:, :E] = gate pre-activation, pre[:, E:2E] = candidate
    # pre-activation.  Two MXU dots accumulating in f32 replace the old
    # wrapper-side concat (no extra HBM pass over the activations).
    pre = jnp.dot(x_f32.astype(cd), wx_ref[...], preferred_element_type=jnp.float32)
    pre = pre + jnp.dot(lit_ref[...].astype(cd), wl_ref[...],
                        preferred_element_type=jnp.float32)
    pre = pre + b_ref[...]                   # fused bias, (1, Wtot) broadcast over rows

    z = jax.nn.sigmoid(pre[:, :entity_dim])                  # gate       (EUP)
    h = jnp.tanh(pre[:, entity_dim:2 * entity_dim])          # candidate  (EUP)

    # z*h + (1-z)*x == x + z*(h - x): one fewer VALU op per element.
    o_ref[...] = (x_f32 + z * (h - x_f32)).astype(o_ref.dtype)


def prepare_params(raw, entity_dim, literal_dim, compute_dtype=jnp.bfloat16):
    """Column-pack the four Linear weights into Wx (E, Wtot), Wl (L, Wtot) + fused bias.

    Gate output columns sit at [0:E], candidate output columns at [E:2E]; only
    the total width (2E) is rounded up to the 128-lane granule.  `raw` holds
    pre-transposed (in, out) weights as produced by init_params().
    """
    E, L = entity_dim, literal_dim
    wtot = _round_up(2 * E, 128)

    wx = jnp.zeros((E, wtot), jnp.float32)
    wx = wx.at[:, :E].set(raw["w_gate_entity"])
    wx = wx.at[:, E:2 * E].set(raw["w_comb_entity"])

    wl = jnp.zeros((L, wtot), jnp.float32)
    wl = wl.at[:, :E].set(raw["w_gate_literal"])
    wl = wl.at[:, E:2 * E].set(raw["w_comb_literal"])

    b = jnp.zeros((1, wtot), jnp.float32)
    b = b.at[:, :E].set(raw["gate_bias"])
    b = b.at[:, E:2 * E].set(raw["comb_bias"])

    return {"wx": wx.astype(compute_dtype), "wl": wl.astype(compute_dtype),
            "bias": b, "wtot": wtot}


def gated_combination(x, literal, fused, *, tb=None, out_dtype=None,
                      vmem_limit_bytes=None):
    """Pallas forward.

    x: (B, E) f32, literal: (B, L) f32, fused: output of prepare_params().
    out_dtype: pass jnp.bfloat16 to halve output store traffic when the
      downstream consumer tolerates it (defaults to x.dtype).
    """
    B, E = x.shape
    Bl, L = literal.shape
    assert B == Bl
    wx, wl, b = fused["wx"], fused["wl"], fused["bias"]
    wtot = int(fused["wtot"])
    assert wx.shape == (E, wtot) and wl.shape == (L, wtot) and b.shape == (1, wtot)

    out_dtype = x.dtype if out_dtype is None else out_dtype
    out_isz = jnp.dtype(out_dtype).itemsize

    if tb is None:
        # Big tiles amortize the ~0.35 us per-grid-step overhead (dominant at
        # small E+L); cap the double-buffered activation blocks at ~8 MiB of
        # VMEM and keep >= 2 grid steps when the batch allows so both v7x
        # TensorCores get work.
        act_bytes_per_row = 2 * ((E + L) * 4 + E * out_isz)   # double-buffered in + out
        tb_cap = max(8, (min(8192, (8 << 20) // max(1, act_bytes_per_row)) // 8) * 8)
        tb = min(tb_cap, max(8, _round_up(pl.cdiv(B, 2), 8)))
    tb = max(8, _round_up(tb, 8))

    grid = (pl.cdiv(B, tb),)   # ragged last block handled by Pallas; no pad / out[:B] pass

    # Resident weights: (E+L)*Wtot*itemsize (x2 when double-buffered).  Once
    # large, single-buffer them so residency also fits v7x's 32 MiB scoped
    # default / 64 MiB physical VMEM (raise vmem_limit_bytes or K-tile beyond
    # that -- see TODO above).
    w_bytes = (E + L) * wtot * jnp.dtype(wx.dtype).itemsize
    single_buffer_weights = w_bytes > (8 << 20)

    def _resident(shape):
        if single_buffer_weights:
            try:
                return pl.BlockSpec(shape, lambda i: (0, 0), pipeline_mode=pl.Buffered(1))
            except TypeError:   # BlockSpec without pipeline_mode support
                pass
        return pl.BlockSpec(shape, lambda i: (0, 0))

    compiler_kwargs = dict(dimension_semantics=("parallel",))
    if vmem_limit_bytes is not None:
        compiler_kwargs["vmem_limit_bytes"] = vmem_limit_bytes

    return pl.pallas_call(
        functools.partial(_gated_combination_kernel, entity_dim=E),
        out_shape=jax.ShapeDtypeStruct((B, E), out_dtype),
        grid_spec=pltpu.PrefetchScalarGridSpec(
            num_scalar_prefetch=0,
            grid=grid,
            in_specs=[
                pl.BlockSpec((tb, E), lambda i: (i, 0)),   # entity rows (f32, also residual)
                pl.BlockSpec((tb, L), lambda i: (i, 0)),   # literal rows (f32)
                _resident((E, wtot)),                      # packed entity-side weights
                _resident((L, wtot)),                      # packed literal-side weights
                _resident((1, wtot)),                      # fused bias (f32)
            ],
            out_specs=pl.BlockSpec((tb, E), lambda i: (i, 0)),
        ),
        compiler_params=pltpu.CompilerParams(**compiler_kwargs),
    )(x, literal, wx, wl, b)


def init_params(key, entity_dim, literal_dim, dtype=jnp.float32):
    """Deterministic init mirroring the nn.Linear shapes (stored as (in, out))."""
    k1, k2, k3, k4 = jax.random.split(key, 4)
    scale_comb = 1.0 / jnp.sqrt(entity_dim + literal_dim)
    scale_ent = 1.0 / jnp.sqrt(entity_dim)
    scale_lit = 1.0 / jnp.sqrt(literal_dim)

    # combination_linear_layer: Linear(E+L, E) with bias (split by input rows).
    w_comb = jax.random.uniform(
        k1, (entity_dim + literal_dim, entity_dim), dtype,
        minval=-scale_comb, maxval=scale_comb)
    b_comb = jax.random.uniform(
        k2, (1, entity_dim), dtype, minval=-scale_comb, maxval=scale_comb)

    # gate_entity_layer: Linear(E, E, bias=False)
    w_ge = jax.random.uniform(
        k3, (entity_dim, entity_dim), dtype, minval=-scale_ent, maxval=scale_ent)
    # gate_literal_layer: Linear(L, E, bias=False)
    w_gl = jax.random.uniform(
        k4, (literal_dim, entity_dim), dtype, minval=-scale_lit, maxval=scale_lit)

    # self.bias = nn.Parameter(torch.zeros(entity_dim))
    gate_bias = jnp.zeros((1, entity_dim), dtype)

    return {
        "w_comb_entity": w_comb[:entity_dim, :],
        "w_comb_literal": w_comb[entity_dim:, :],
        "comb_bias": b_comb,
        "w_gate_entity": w_ge,
        "w_gate_literal": w_gl,
        "gate_bias": gate_bias,
    }


def reference(x, literal, params):
    """Pure-JAX f32 reference of the PyTorch forward (HIGHEST-precision dots)."""
    hp = jax.lax.Precision.HIGHEST
    z = jax.nn.sigmoid(
        jnp.dot(x, params["w_gate_entity"], precision=hp)
        + jnp.dot(literal, params["w_gate_literal"], precision=hp)
        + params["gate_bias"]
    )
    h = jnp.tanh(
        jnp.dot(x, params["w_comb_entity"], precision=hp)
        + jnp.dot(literal, params["w_comb_literal"], precision=hp)
        + params["comb_bias"]
    )
    return z * h + (1.0 - z) * x


if __name__ == "__main__":
    B = 256          # batch (tiled into tb=128 rows -> 2 grid steps)
    E = 32           # entity_embedding_dim (deliberately not a multiple of 128)
    L = 16           # literal_embedding_dim

    key = jax.random.PRNGKey(0)
    kx, klit, kp = jax.random.split(key, 3)

    x = jax.random.normal(kx, (B, E), jnp.float32)
    literal = jax.random.normal(klit, (B, L), jnp.float32)
    raw = init_params(kp, E, L)
    ref = reference(x, literal, raw)

    # 1) f32-weights run: validates the tight column packing + non-128 slices.
    fused_f32 = prepare_params(raw, E, L, compute_dtype=jnp.float32)
    out_f32 = jax.block_until_ready(gated_combination(x, literal, fused_f32))
    assert out_f32.shape == (B, E)
    err = float(jnp.max(jnp.abs(out_f32 - ref)))
    assert err < 2e-2, f"f32 kernel mismatch vs reference (max abs err {err})"

    # 2) bf16-weights fast path (default); residual & accumulation stay f32.
    fused_bf16 = prepare_params(raw, E, L, compute_dtype=jnp.bfloat16)
    out = jax.block_until_ready(gated_combination(x, literal, fused_bf16))
    assert out.shape == (B, E) and out.dtype == jnp.float32
    err = float(jnp.max(jnp.abs(out - ref)))
    assert err < 3e-2, f"bf16 kernel mismatch vs reference (max abs err {err})"

    # 3) bf16-output variant (halves output store traffic for tolerant consumers).
    out_b = jax.block_until_ready(
        gated_combination(x, literal, fused_bf16, out_dtype=jnp.bfloat16))
    assert out_b.dtype == jnp.bfloat16
    err = float(jnp.max(jnp.abs(out_b.astype(jnp.float32) - ref)))
    assert err < 6e-2, f"bf16-output kernel mismatch vs reference (max abs err {err})"

    print("KERNEL_OK")
</pallas_src>

<mosaic_0001>
module attributes {stable_mosaic.version = 11 : i64} {
  func.func @_gated_combination_kernel(%arg0: i32, %arg1: memref<128x32xf32, #tpu.memory_space<vmem>>, %arg2: memref<128x16xf32, #tpu.memory_space<vmem>>, %arg3: memref<32x128xf32, #tpu.memory_space<vmem>>, %arg4: memref<16x128xf32, #tpu.memory_space<vmem>>, %arg5: memref<1x128xf32, #tpu.memory_space<vmem>>, %arg6: memref<128x32xf32, #tpu.memory_space<vmem>>) attributes {dimension_semantics = [#tpu.dimension_semantics<parallel>], iteration_bounds = array<i64: 2>, scalar_prefetch = 0 : i64, scratch_operands = 0 : i64, tpu.core_type = #tpu.core_type<tc>, window_params = [{transform_indices = @transform_0, window_bounds = array<i64: 128, 32>}, {transform_indices = @transform_1, window_bounds = array<i64: 128, 16>}, {pipeline_mode = #tpu.pipeline_mode<synchronous>, transform_indices = @transform_2, window_bounds = array<i64: 32, 128>}, {pipeline_mode = #tpu.pipeline_mode<synchronous>, transform_indices = @transform_3, window_bounds = array<i64: 16, 128>}, {pipeline_mode = #tpu.pipeline_mode<synchronous>, transform_indices = @transform_4, window_bounds = array<i64: 1, 128>}, {transform_indices = @transform_5, window_bounds = array<i64: 128, 32>}]} {
    %c0 = arith.constant 0 : index
    %c0_0 = arith.constant 0 : index
    %0 = vector.load %arg1[%c0, %c0_0] : memref<128x32xf32, #tpu.memory_space<vmem>>, vector<128x32xf32>
    %c0_1 = arith.constant 0 : index
    %c0_2 = arith.constant 0 : index
    %1 = vector.load %arg3[%c0_1, %c0_2] : memref<32x128xf32, #tpu.memory_space<vmem>>, vector<32x128xf32>
    %cst = arith.constant dense<0.000000e+00> : vector<128x128xf32>
    %2 = tpu.matmul %0, %1, %cst {dimension_numbers = #tpu.dot_dimension_numbers<[1], [0], [0], [1], [0, 0, 1, 1], [], []>} : vector<128x32xf32>, vector<32x128xf32>, vector<128x128xf32> -> vector<128x128xf32>
    %c0_3 = arith.constant 0 : index
    %c0_4 = arith.constant 0 : index
    %3 = vector.load %arg2[%c0_3, %c0_4] : memref<128x16xf32, #tpu.memory_space<vmem>>, vector<128x16xf32>
    %c0_5 = arith.constant 0 : index
    %c0_6 = arith.constant 0 : index
    %4 = vector.load %arg4[%c0_5, %c0_6] : memref<16x128xf32, #tpu.memory_space<vmem>>, vector<16x128xf32>
    %cst_7 = arith.constant dense<0.000000e+00> : vector<128x128xf32>
    %5 = tpu.matmul %3, %4, %cst_7 {dimension_numbers = #tpu.dot_dimension_numbers<[1], [0], [0], [1], [0, 0, 1, 1], [], []>} : vector<128x16xf32>, vector<16x128xf32>, vector<128x128xf32> -> vector<128x128xf32>
    %6 = arith.addf %2, %5 : vector<128x128xf32>
    %c0_8 = arith.constant 0 : index
    %c0_9 = arith.constant 0 : index
    %7 = vector.load %arg5[%c0_8, %c0_9] : memref<1x128xf32, #tpu.memory_space<vmem>>, vector<1x128xf32>
    %8 = vector.broadcast %7 : vector<1x128xf32> to vector<128x128xf32>
    %9 = arith.addf %6, %8 : vector<128x128xf32>
    %10 = vector.extract_strided_slice %9 {offsets = [0, 0], sizes = [128, 32], strides = [1, 1]} : vector<128x128xf32> to vector<128x32xf32>
    %11 = arith.negf %10 : vector<128x32xf32>
    %12 = math.exp %11 : vector<128x32xf32>
    %cst_10 = arith.constant 1.000000e+00 : f32
    %13 = vector.broadcast %cst_10 : f32 to vector<128x32xf32>
    %14 = arith.addf %13, %12 : vector<128x32xf32>
    %15 = arith.divf %13, %14 : vector<128x32xf32>
    %16 = vector.extract_strided_slice %9 {offsets = [0, 32], sizes = [128, 32], strides = [1, 1]} : vector<128x128xf32> to vector<128x32xf32>
    %17 = math.tanh %16 : vector<128x32xf32>
    %18 = arith.subf %17, %0 : vector<128x32xf32>
    %19 = arith.mulf %15, %18 : vector<128x32xf32>
    %20 = arith.addf %0, %19 : vector<128x32xf32>
    %c0_11 = arith.constant 0 : index
    %c0_12 = arith.constant 0 : index
    %21 = vector.load %arg6[%c0_11, %c0_12] : memref<128x32xf32, #tpu.memory_space<vmem>>, vector<128x32xf32>
    tpu.vector_store %arg6[%c0_11, %c0_12], %20 {strides = array<i32>} : memref<128x32xf32, #tpu.memory_space<vmem>>, vector<128x32xf32>,
    return
  }
  func.func @transform_0(%arg0: i32) -> (i32, i32) {
    %c0_i32 = arith.constant 0 : i32
    %c0_i32_0 = arith.constant 0 : i32
    return %arg0, %c0_i32 : i32, i32
  }
  func.func @transform_1(%arg0: i32) -> (i32, i32) {
    %c0_i32 = arith.constant 0 : i32
    %c0_i32_0 = arith.constant 0 : i32
    return %arg0, %c0_i32 : i32, i32
  }
  func.func @transform_2(%arg0: i32) -> (i32, i32) {
    %c0_i32 = arith.constant 0 : i32
    %c0_i32_0 = arith.constant 0 : i32
    %c0_i32_1 = arith.constant 0 : i32
    return %c0_i32, %c0_i32_0 : i32, i32
  }
  func.func @transform_3(%arg0: i32) -> (i32, i32) {
    %c0_i32 = arith.constant 0 : i32
    %c0_i32_0 = arith.constant 0 : i32
    %c0_i32_1 = arith.constant 0 : i32
    return %c0_i32, %c0_i32_0 : i32, i32
  }
  func.func @transform_4(%arg0: i32) -> (i32, i32) {
    %c0_i32 = arith.constant 0 : i32
    %c0_i32_0 = arith.constant 0 : i32
    %c0_i32_1 = arith.constant 0 : i32
    return %c0_i32, %c0_i32_0 : i32, i32
  }
  func.func @transform_5(%arg0: i32) -> (i32, i32) {
    %c0_i32 = arith.constant 0 : i32
    %c0_i32_0 = arith.constant 0 : i32
    return %arg0, %c0_i32 : i32, i32
  }
}

</mosaic_0001>

<bundles_post_ra>
// kernel: tpu_custom_call.1
= control target key start
LH: loop header
LB: loop body
LE: loop exit
PB: predicated region body
PF: predicated region fallthrough
CT: control target
= control target key end

     0   :  { %s1361_s18 = smov 0   ;;  %s1703_s0 = inlined_call_operand.vmem [shape: f32[256,32], index: 0, kind: input, shape index: {}]   ;;  %s1704_s1 = inlined_call_operand.vmem [shape: f32[256,16], index: 1, kind: input, shape index: {}]   ;;  %s1705_s2 = inlined_call_operand.vmem [shape: f32[32,128], index: 2, kind: input, shape index: {}]   ;;  %s1706_s3 = inlined_call_operand.vmem [shape: f32[16,128], index: 3, kind: input, shape index: {}]   ;;  %s1707_s4 = inlined_call_operand.vmem [shape: f32[1,128], index: 4, kind: input, shape index: {}]   ;;  %s1708_s5 = inlined_call_operand.vmem [shape: f32[256,32], index: 5, kind: output, shape index: {}]  }
   0x1 LB: > { %s1055_s19 = sadd.s32 4294967295, %s1327_s18   ;;  %p1059_p0 = scmp.ge.s32.totalorder %s1327_s18, 1  ;;  %s1327_s18 = sphi %s1361_s18, %s15_s18  }
   0x2   : > { %p199_p1 = scmp.lt.s32.totalorder %s1327_s18, 3 }
   0x4   : > { %p200_p2 = pnand %p1059_p0, %p199_p1 }
   0x5   : > { %s1060_s26 = sshll.u32 (!%p200_p2), %s1055_s19, 4  ;;  %s1329_s15 = smov (!%p200_p2), 32  }
   0x6   : > { %203 = sbr.rel (%p200_p2) target bundleno = 385 (0x181), region = 40  ;;  %p233_p3 = scmp.lt.s32.totalorder (!%p200_p2), %s1060_s26, 31 }
   0x7   : > { %s1330_s19 = smov (!%p200_p2), 96  }
   0xb   : > { %v269_v0 = vld [vmem:[%s1705_s2 + $0x18] sm:$0xff]  ;;  %v268_v1 = vld [vmem:[%s1705_s2 + $0x10] sm:$0xff]  ;;  %v287_v2 = vld [vmem:[%s1706_s3 + $0x8] sm:$0xff]  ;;  %s1710_s26 = smov (!%p233_p3, %s1060_s26), 31  ;;  %vm288_vm0 = vcmask 130048   ;;  %vm482_vm1 = vcmask 261120  }
   0xc   : > { %1183 = vmatprep.subr.mxu1 %v269_v0  ;;  %1155 = vmatprep.subr.mxu0 %v287_v2  ;;  %v286_v3 = vld [vmem:[%s1706_s3] sm:$0xff]  ;;  %v267_v4 = vld [vmem:[%s1705_s2 + $0x8] sm:$0xff]  ;;  %s1387_s8 = sshll.u32 %s1710_s26, 3 }
   0xd   : > { %1184 = vmatpush3.msra.mxu1 %v269_v0  ;;  %1156 = vmatpush3.msra.mxu0 %v287_v2  ;;  %v266_v5 = vld [vmem:[%s1705_s2] sm:$0xff]  ;;  %s1393_s11 = scalar_lea.vmem %s1704_s1, %s1387_s8  ;;  %s1400_s14 = scalar_lea.vmem %s1703_s0, %s1387_s8 }
   0xe   : > { %1185 = vmatprep.subr.mxu1 %v268_v1  ;;  %1157 = vmatprep.subr.mxu0 %v286_v3  ;;  %v270_v6 = vld [vmem:[%s1393_s11] sm:$0xff]  ;;  %v271_v7 = vld [vmem:[%s1393_s11 + $0x8] sm:$0xff]  ;;  %v272_v8 = vld [vmem:[%s1393_s11 + $0x10] sm:$0xff]  ;;  %s1648_s22 = scalar_lea.vmem %s1708_s5, %s1387_s8 }
   0xf   : > { %1186 = vmatpush3.msra.mxu1 %v268_v1  ;;  %1158 = vmatpush3.msra.mxu0 %v286_v3  ;;  %v1406_v9 = vld [vmem:[%s1400_s14] sm:$0xff]  ;;  %v1409_v10 = vld [vmem:[%s1400_s14 + $0x8] sm:$0xff]  ;;  %v1412_v11 = vld [vmem:[%s1400_s14 + $0x10] sm:$0xff] }
  0x10   : > { %1187 = vmatprep.subr.mxu1 %v267_v4  ;;  %1159 = vmatprep.mubr.msk.f32.mxu0 %vm288_vm0, %v270_v6  ;;  %v273_v12 = vld [vmem:[%s1393_s11 + $0x18] sm:$0xff]  ;;  %v274_v14 = vld [vmem:[%s1393_s11 + $0x20] sm:$0xff]  ;;  %v275_v16 = vld [vmem:[%s1393_s11 + $0x28] sm:$0xff] }
  0x11   : > { %1188 = vmatpush3.msra.mxu1 %v267_v4  ;;  %1191 = vmatprep.mubr.msk.f32.mxu1 %vm482_vm1, %v1406_v9  ;;  %v1424_v13 = vld [vmem:[%s1400_s14 + $0x18] sm:$0xff]  ;;  %v1430_v15 = vld [vmem:[%s1400_s14 + $0x20] sm:$0xff]  ;;  %v1442_v17 = vld [vmem:[%s1400_s14 + $0x28] sm:$0xff] }
  0x12   : > { %1189 = vmatprep.subr.mxu1 %v266_v5  ;;  %1160 = vmatmul.mubr.msk.f32.vlgmr.msra.gmra.mxu0 %vm288_vm0, %v271_v7  ;;  %v276_v18 = vld [vmem:[%s1393_s11 + $0x30] sm:$0xff]  ;;  %v277_v20 = vld [vmem:[%s1393_s11 + $0x38] sm:$0xff]  ;;  %v278_v22 = vld [vmem:[%s1393_s11 + $0x40] sm:$0xff] }
  0x13   : > { %1190 = vmatpush3.msra.mxu1 %v266_v5  ;;  %1162 = vmatprep.mubr.msk.f32.mxu0 %vm288_vm0, %v272_v8  ;;  %v1448_v19 = vld [vmem:[%s1400_s14 + $0x30] sm:$0xff]  ;;  %v1460_v21 = vld [vmem:[%s1400_s14 + $0x38] sm:$0xff]  ;;  %v1466_v23 = vld [vmem:[%s1400_s14 + $0x40] sm:$0xff] }
  0x14   : > { %1192 = vmatmul.mubr.msk.f32.vlgmr.msra.gmra.mxu1 %vm482_vm1, %v1409_v10  ;;  %811 = vrot.lane.b32.xlu0 %v1406_v9, %s1329_s15  ;;  %v279_v24 = vld [vmem:[%s1393_s11 + $0x48] sm:$0xff]  ;;  %v280_v26 = vld [vmem:[%s1393_s11 + $0x50] sm:$0xff]  ;;  %v281_v28 = vld [vmem:[%s1393_s11 + $0x58] sm:$0xff] }
  0x15   : > { %1194 = vmatprep.mubr.msk.f32.mxu1 %vm482_vm1, %v1412_v11  ;;  %815 = vrot.lane.b32.xlu1 %v1412_v11, %s1329_s15  ;;  %v1478_v25 = vld [vmem:[%s1400_s14 + $0x48] sm:$0xff]  ;;  %v1484_v27 = vld [vmem:[%s1400_s14 + $0x50] sm:$0xff]  ;;  %v1496_v29 = vld [vmem:[%s1400_s14 + $0x58] sm:$0xff] }
  0x16   : > { %1163 = vmatmul.mubr.msk.f32.gmra.mxu0 %vm288_vm0, %v273_v12  ;;  %v282_v30 = vld [vmem:[%s1393_s11 + $0x60] sm:$0xff]  ;;  %v283_v32 = vld [vmem:[%s1393_s11 + $0x68] sm:$0xff]  ;;  %v284_v34 = vld [vmem:[%s1393_s11 + $0x70] sm:$0xff] }
  0x17   : > { %1165 = vmatprep.mubr.msk.f32.mxu0 %vm288_vm0, %v274_v14  ;;  %v1502_v31 = vld [vmem:[%s1400_s14 + $0x60] sm:$0xff]  ;;  %v1514_v33 = vld [vmem:[%s1400_s14 + $0x68] sm:$0xff]  ;;  %v1520_v35 = vld [vmem:[%s1400_s14 + $0x70] sm:$0xff] }
  0x18   : > { %1195 = vmatmul.mubr.msk.f32.gmra.mxu1 %vm482_vm1, %v1424_v13  ;;  %813 = vrot.lane.b32.xlu0 %v1409_v10, %s1329_s15  ;;  %v285_v36 = vld [vmem:[%s1393_s11 + $0x78] sm:$0xff]  ;;  %v1548_v40 = vld [vmem:[%s1707_s4] ss:$0 sm:$0xff] }
  0x19   : > { %1197 = vmatprep.mubr.msk.f32.mxu1 %vm482_vm1, %v1430_v15  ;;  %817 = vrot.lane.b32.xlu1 %v1424_v13, %s1329_s15  ;;  %v1532_v37 = vld [vmem:[%s1400_s14 + $0x78] sm:$0xff] }
  0x1a   : > { %1166 = vmatmul.mubr.msk.f32.gmra.mxu0 %vm288_vm0, %v275_v16 }
  0x1b   : > { %1168 = vmatprep.mubr.msk.f32.mxu0 %vm288_vm0, %v276_v18 }
  0x1c   : > { %1198 = vmatmul.mubr.msk.f32.gmra.mxu1 %vm482_vm1, %v1442_v17  ;;  %819 = vrot.lane.b32.xlu0 %v1430_v15, %s1329_s15 }
  0x1d   : > { %1200 = vmatprep.mubr.msk.f32.mxu1 %vm482_vm1, %v1448_v19  ;;  %821 = vrot.lane.b32.xlu1 %v1442_v17, %s1329_s15 }
  0x1e   : > { %1169 = vmatmul.mubr.msk.f32.gmra.mxu0 %vm288_vm0, %v277_v20 }
  0x1f   : > { %1171 = vmatprep.mubr.msk.f32.mxu0 %vm288_vm0, %v278_v22 }
  0x20   : > { %1201 = vmatmul.mubr.msk.f32.gmra.mxu1 %vm482_vm1, %v1460_v21  ;;  %823 = vrot.lane.b32.xlu0 %v1448_v19, %s1329_s15 }
  0x21   : > { %1203 = vmatprep.mubr.msk.f32.mxu1 %vm482_vm1, %v1466_v23  ;;  %825 = vrot.lane.b32.xlu1 %v1460_v21, %s1329_s15 }
  0x22   : > { %1172 = vmatmul.mubr.msk.f32.gmra.mxu0 %vm288_vm0, %v279_v24 }
  0x23   : > { %1174 = vmatprep.mubr.msk.f32.mxu0 %vm288_vm0, %v280_v26 }
  0x24   : > { %1204 = vmatmul.mubr.msk.f32.gmra.mxu1 %vm482_vm1, %v1478_v25  ;;  %827 = vrot.lane.b32.xlu0 %v1466_v23, %s1329_s15 }
  0x25   : > { %1206 = vmatprep.mubr.msk.f32.mxu1 %vm482_vm1, %v1484_v27  ;;  %829 = vrot.lane.b32.xlu1 %v1478_v25, %s1329_s15 }
  0x26   : > { %1175 = vmatmul.mubr.msk.f32.gmra.mxu0 %vm288_vm0, %v281_v28 }
  0x27   : > { %1177 = vmatprep.mubr.msk.f32.mxu0 %vm288_vm0, %v282_v30 }
  0x28   : > { %1207 = vmatmul.mubr.msk.f32.gmra.mxu1 %vm482_vm1, %v1496_v29  ;;  %831 = vrot.lane.b32.xlu0 %v1484_v27, %s1329_s15 }
  0x29   : > { %1209 = vmatprep.mubr.msk.f32.mxu1 %vm482_vm1, %v1502_v31  ;;  %833 = vrot.lane.b32.xlu1 %v1496_v29, %s1329_s15 }
  0x2a   : > { %1178 = vmatmul.mubr.msk.f32.gmra.mxu0 %vm288_vm0, %v283_v32 }
  0x2b   : > { %1180 = vmatprep.mubr.msk.f32.mxu0 %vm288_vm0, %v284_v34 }
  0x2c   : > { %1210 = vmatmul.mubr.msk.f32.gmra.mxu1 %vm482_vm1, %v1514_v33  ;;  %835 = vrot.lane.b32.xlu0 %v1502_v31, %s1329_s15 }
  0x2d   : > { %1212 = vmatprep.mubr.msk.f32.mxu1 %vm482_vm1, %v1520_v35  ;;  %837 = vrot.lane.b32.xlu1 %v1514_v33, %s1329_s15 }
  0x2e   : > { %1181 = vmatmul.mubr.msk.f32.gmra.mxu0 %vm288_vm0, %v285_v36 }
  0x30   : > { %1213 = vmatmul.mubr.msk.f32.gmra.mxu1 %vm482_vm1, %v1532_v37  ;;  %839 = vrot.lane.b32.xlu0 %v1520_v35, %s1329_s15 }
  0x31   : > { %841 = vrot.lane.b32.xlu1 %v1532_v37, %s1329_s15 }
  0x86   : > { %v812_v61 = vpop.permute.xlu0 %811 }
  0x87   : > { %v816_v56 = vpop.permute.xlu1 %815 }
  0x8a   : > { %v814_v16 = vpop.permute.xlu0 %813 }
  0x8b   : > { %v818_v6 = vpop.permute.xlu1 %817 }
  0xd2   : > { %v1161_v38 = vpop.f32.mrf.mxu0 }
  0xd4   : > { %v1193_v39 = vpop.f32.mrf.mxu1  ;;  %v403_v42 = vpop.f32.mrf.mxu0 }
  0xd5   : > { %v603_v41 = vadd.f32 %v1193_v39, %v1161_v38  ;;  %v822_v38 = vpop.permute.xlu1 %821 }
  0xd6   : > { %v597_v43 = vpop.f32.mrf.mxu1  ;;  %v1164_v46 = vpop.f32.mrf.mxu0 }
  0xd7   : > { %v1551_v44 = vadd.f32 %v1548_v40, %v603_v41  ;;  %v598_v45 = vadd.f32 %v597_v43, %v403_v42 }
  0xd8   : > { %v1196_v47 = vpop.f32.mrf.mxu1  ;;  %v413_v50 = vpop.f32.mrf.mxu0 }
  0xd9   : > { %1225 = vtanh.f32 %v1551_v44  ;;  %v1555_v48 = vadd.f32 %v1548_v40, %v598_v45  ;;  %v613_v49 = vadd.f32 %v1196_v47, %v1164_v46 }
  0xda   : > { %v607_v51 = vpop.f32.mrf.mxu1  ;;  %v1167_v54 = vpop.f32.mrf.mxu0 }
  0xdb   : > { %v1558_v52 = vadd.f32 %v1548_v40, %v613_v49  ;;  %v608_v53 = vadd.f32 %v607_v51, %v413_v50  ;;  %1227 = vtanh.f32 %v1555_v48  ;;  %v820_v50 = vpop.permute.xlu0 %819 }
  0xdc   : > { %v1199_v55 = vpop.f32.mrf.mxu1  ;;  %v423_v59 = vpop.f32.mrf.mxu0 }
  0xdd   : > { %v1562_v57 = vadd.f32 %v1548_v40, %v608_v53  ;;  %v623_v58 = vadd.f32 %v1199_v55, %v1167_v54  ;;  %1229 = vtanh.f32 %v1558_v52 }
  0xde   : > { %v617_v60 = vpop.f32.mrf.mxu1  ;;  %v1170_v0 = vpop.f32.mrf.mxu0 }
  0xdf   : > { %v1566_v62 = vadd.f32 %v1548_v40, %v623_v58  ;;  %v618_v63 = vadd.f32 %v617_v60, %v423_v59  ;;  %1231 = vtanh.f32 %v1562_v57  ;;  %v826_v58 = vpop.permute.xlu1 %825 }
  0xe0   : > { %v1202_v1 = vpop.f32.mrf.mxu1  ;;  %v433_v4 = vpop.f32.mrf.mxu0 }
  0xe1   : > { %v1570_v2 = vadd.f32 %v1548_v40, %v618_v63  ;;  %v633_v3 = vadd.f32 %v1202_v1, %v1170_v0  ;;  %1233 = vtanh.f32 %v1566_v62 }
  0xe2   : > { %v627_v5 = vpop.f32.mrf.mxu1  ;;  %v1173_v12 = vpop.f32.mrf.mxu0 }
  0xe3   : > { %v1574_v7 = vadd.f32 %v1548_v40, %v633_v3  ;;  %v628_v8 = vadd.f32 %v627_v5, %v433_v4  ;;  %1235 = vtanh.f32 %v1570_v2 }
  0xe4   : > { %v1205_v14 = vpop.f32.mrf.mxu1  ;;  %v443_v22 = vpop.f32.mrf.mxu0 }
  0xe5   : > { %v1578_v18 = vadd.f32 %v1548_v40, %v628_v8  ;;  %v643_v20 = vadd.f32 %v1205_v14, %v1173_v12  ;;  %1237 = vtanh.f32 %v1574_v7  ;;  %v830_v14 = vpop.permute.xlu1 %829 }
  0xe6   : > { %v1226_v24 = vpop.eup %1225  ;;  %v637_v26 = vpop.f32.mrf.mxu1 }
  0xe7   : > { %v1582_v28 = vadd.f32 %v1548_v40, %v643_v20  ;;  %v860_v30 = vsub.f32 %v1226_v24, %v814_v16  ;;  %v1176_v32 = vpop.f32.mrf.mxu0  ;;  %1239 = vtanh.f32 %v1578_v18  ;;  %v638_v34 = vadd.f32 %v637_v26, %v443_v22 }
  0xe8   : > { %v1208_v36 = vpop.f32.mrf.mxu1  ;;  %v1228_v39 = vpop.eup %1227 }
  0xe9   : > { %893 = vrot.lane.b32.xlu1 %v860_v30, %s1330_s19  ;;  %v453_v41 = vpop.f32.mrf.mxu0  ;;  %v859_v42 = vsub.f32 %v1228_v39, %v812_v61  ;;  %1241 = vtanh.f32 %v1582_v28  ;;  %v1588_v46 = vadd.f32 %v1548_v40, %v638_v34  ;;  %v653_v47 = vadd.f32 %v1208_v36, %v1176_v32 }
  0xea   : > { %v647_v43 = vpop.f32.mrf.mxu1  ;;  %v1230_v45 = vpop.eup %1229 }
  0xeb   : > { %v862_v49 = vsub.f32 %v1230_v45, %v818_v6  ;;  %891 = vrot.lane.b32.xlu0 %v859_v42, %s1330_s19  ;;  %v1179_v53 = vpop.f32.mrf.mxu0  ;;  %1243 = vtanh.f32 %v1588_v46  ;;  %v1594_v60 = vadd.f32 %v1548_v40, %v653_v47  ;;  %v648_v61 = vadd.f32 %v647_v43, %v453_v41  ;;  %v824_v6 = vpop.permute.xlu0 %823 }
  0xec   : > { %v1232_v51 = vpop.eup %1231  ;;  %v1211_v54 = vpop.f32.mrf.mxu1 }
  0xed   : > { %v861_v55 = vsub.f32 %v1232_v51, %v816_v56  ;;  %897 = vrot.lane.b32.xlu1 %v862_v49, %s1330_s19  ;;  %v463_v1 = vpop.f32.mrf.mxu0  ;;  %v663_v5 = vadd.f32 %v1211_v54, %v1179_v53  ;;  %1245 = vtanh.f32 %v1594_v60  ;;  %v1600_v8 = vadd.f32 %v1548_v40, %v648_v61 }
  0xee   : > { %v1234_v59 = vpop.eup %1233  ;;  %v657_v3 = vpop.f32.mrf.mxu1 }
  0xef   : > { %v864_v63 = vsub.f32 %v1234_v59, %v822_v38  ;;  %895 = vrot.lane.b32.xlu0 %v861_v55, %s1330_s19  ;;  %v1182_v20 = vpop.f32.mrf.mxu0  ;;  %v1605_v30 = vadd.f32 %v1548_v40, %v663_v5  ;;  %v658_v32 = vadd.f32 %v657_v3, %v463_v1  ;;  %1247 = vtanh.f32 %v1600_v8  ;;  %v828_v42 = vpop.permute.xlu0 %827 }
  0xf0   : > { %v1236_v0 = vpop.eup %1235  ;;  %v1214_v22 = vpop.f32.mrf.mxu1 }
  0xf1   : > { %v863_v4 = vsub.f32 %v1236_v0, %v820_v50  ;;  %901 = vrot.lane.b32.xlu1 %v864_v63, %s1330_s19  ;;  %v673_v36 = vadd.f32 %v1214_v22, %v1182_v20  ;;  %v473_v38 = vpop.f32.mrf.mxu0  ;;  %1249 = vtanh.f32 %v1605_v30  ;;  %v1612_v41 = vadd.f32 %v1548_v40, %v658_v32  ;;  %v834_v50 = vpop.permute.xlu1 %833 }
  0xf2   : > { %v1238_v56 = vpop.eup %1237  ;;  %v667_v39 = vpop.f32.mrf.mxu1  ;;  %v1099_v20 = vmul.f32 -1.442695, %v1555_v48  ;;  %v1102_v22 = vmul.f32 -1.442695, %v1558_v52  ;;  %v1103_v32 = vmul.f32 -1.442695, %v1570_v2 }
  0xf3   : > { %v866_v12 = vsub.f32 %v1238_v56, %v826_v58  ;;  %899 = vrot.lane.b32.xlu0 %v863_v4, %s1330_s19  ;;  %v668_v43 = vadd.f32 %v667_v39, %v473_v38  ;;  %v1615_v47 = vadd.f32 %v1548_v40, %v673_v36  ;;  %1251 = vtanh.f32 %v1612_v41  ;;  %v832_v55 = vpop.permute.xlu0 %831 }
  0xf4   : > { %v1240_v16 = vpop.eup %1239  ;;  %v1108_v48 = vmul.f32 -1.442695, %v1582_v28 }
  0xf5   : > { %v865_v24 = vsub.f32 %v1240_v16, %v824_v6  ;;  %905 = vrot.lane.b32.xlu1 %v866_v12, %s1330_s19  ;;  %v1619_v51 = vadd.f32 %v1548_v40, %v668_v43  ;;  %1253 = vtanh.f32 %v1615_v47  ;;  %v838_v61 = vpop.permute.xlu1 %837  ;;  %v1100_v16 = vmul.f32 -1.442695, %v1551_v44 }
  0xf6   : > { %v1242_v26 = vpop.eup %1241  ;;  %v1105_v44 = vmul.f32 -1.442695, %v1578_v18  ;;  %v1110_v18 = vmul.f32 -1.442695, %v1594_v60 }
  0xf7   : > { %v868_v34 = vsub.f32 %v1242_v26, %v830_v14  ;;  %903 = vrot.lane.b32.xlu0 %v865_v24, %s1330_s19  ;;  %1255 = vtanh.f32 %v1619_v51  ;;  %v836_v40 = vpop.permute.xlu0 %835  ;;  %v1101_v24 = vmul.f32 -1.442695, %v1562_v57  ;;  %v1104_v26 = vmul.f32 -1.442695, %v1566_v62 }
  0xf8   : > { %v1244_v45 = vpop.eup %1243  ;;  %1257 = vpow2.f32 %v1100_v16  ;;  %v1107_v62 = vmul.f32 -1.442695, %v1588_v46 }
  0xf9   : > { %909 = vrot.lane.b32.xlu1 %v868_v34, %s1330_s19  ;;  %v867_v49 = vsub.f32 %v1244_v45, %v828_v42  ;;  %v842_v3 = vpop.permute.xlu1 %841  ;;  %1259 = vpow2.f32 %v1099_v20  ;;  %v1106_v34 = vmul.f32 -1.442695, %v1574_v7 }
  0xfa   : > { %v1246_v53 = vpop.eup %1245  ;;  %1261 = vpow2.f32 %v1102_v22 }
  0xfb   : > { %907 = vrot.lane.b32.xlu0 %v867_v49, %s1330_s19  ;;  %v870_v54 = vsub.f32 %v1246_v53, %v834_v50  ;;  %v840_v6 = vpop.permute.xlu0 %839  ;;  %1263 = vpow2.f32 %v1101_v24  ;;  %v1109_v53 = vmul.f32 -1.442695, %v1600_v8 }
  0xfc   : > { %v1248_v58 = vpop.eup %1247  ;;  %1265 = vpow2.f32 %v1104_v26 }
  0xfd   : > { %913 = vrot.lane.b32.xlu1 %v870_v54, %s1330_s19  ;;  %v869_v59 = vsub.f32 %v1248_v58, %v832_v55  ;;  %1267 = vpow2.f32 %v1103_v32  ;;  %v1112_v58 = vmul.f32 -1.442695, %v1605_v30  ;;  %v1114_v30 = vmul.f32 -1.442695, %v1615_v47 }
  0xfe   : > { %v1250_v63 = vpop.eup %1249  ;;  %1269 = vpow2.f32 %v1106_v34 }
  0xff   : > { %911 = vrot.lane.b32.xlu0 %v869_v59, %s1330_s19  ;;  %v872_v0 = vsub.f32 %v1250_v63, %v838_v61  ;;  %1271 = vpow2.f32 %v1105_v44 }
 0x100   : > { %v1252_v1 = vpop.eup %1251  ;;  %1273 = vpow2.f32 %v1108_v48 }
 0x101   : > { %917 = vrot.lane.b32.xlu1 %v872_v0, %s1330_s19  ;;  %v871_v4 = vsub.f32 %v1252_v1, %v836_v40  ;;  %v1111_v0 = vmul.f32 -1.442695, %v1612_v41 }
 0x102   : > { %v1254_v56 = vpop.eup %1253 }
 0x103   : > { %v874_v5 = vsub.f32 %v1254_v56, %v842_v3  ;;  %915 = vrot.lane.b32.xlu0 %v871_v4, %s1330_s19 }
 0x104   : > { %v1256_v12 = vpop.eup %1255 }
 0x105   : > { %921 = vrot.lane.b32.xlu1 %v874_v5, %s1330_s19  ;;  %v873_v14 = vsub.f32 %v1256_v12, %v840_v6  ;;  %v1258_v36 = vpop.eup %1257 }
 0x106   : > { %v1260_v52 = vpop.eup %1259  ;;  %v748_v57 = vadd.f32 1.0, %v1258_v36 }
 0x107   : > { %919 = vrot.lane.b32.xlu0 %v873_v14, %s1330_s19  ;;  %v1262_v38 = vpop.eup %1261  ;;  %v747_v42 = vadd.f32 1.0, %v1260_v52  ;;  %v1113_v14 = vmul.f32 -1.442695, %v1619_v51 }
 0x108   : > { %v1264_v39 = vpop.eup %1263  ;;  %1275 = vrcp.f32 %v748_v57  ;;  %v750_v2 = vadd.f32 1.0, %v1262_v38 }
 0x109   : > { %v1266_v43 = vpop.eup %1265  ;;  %v749_v7 = vadd.f32 1.0, %v1264_v39  ;;  %1277 = vpow2.f32 %v1107_v62 }
 0x10a   : > { %v1268_v45 = vpop.eup %1267  ;;  %1279 = vrcp.f32 %v747_v42  ;;  %v752_v28 = vadd.f32 1.0, %v1266_v43 }
 0x10b   : > { %1281 = vrcp.f32 %v750_v2  ;;  %v1270_v49 = vpop.eup %1269  ;;  %v751_v50 = vadd.f32 1.0, %v1268_v45 }
 0x10c   : > { %1283 = vrcp.f32 %v749_v7  ;;  %v1272_v46 = vpop.eup %1271  ;;  %v754_v54 = vadd.f32 1.0, %v1270_v49 }
 0x10d   : > { %1285 = vpow2.f32 %v1110_v18  ;;  %v1274_v55 = vpop.eup %1273  ;;  %v753_v59 = vadd.f32 1.0, %v1272_v46 }
 0x10e   : > { %1287 = vrcp.f32 %v752_v28  ;;  %v756_v60 = vadd.f32 1.0, %v1274_v55 }
 0x10f   : > { %1289 = vrcp.f32 %v751_v50 }
 0x110   : > { %1291 = vpow2.f32 %v1109_v53 }
 0x111   : > { %1293 = vrcp.f32 %v754_v54 }
 0x112   : > { %1295 = vpow2.f32 %v1112_v58 }
 0x113   : > { %1297 = vrcp.f32 %v753_v59 }
 0x114   : > { %1299 = vrcp.f32 %v756_v60 }
 0x115   : > { %v1276_v61 = vpop.eup %1275  ;;  %1301 = vpow2.f32 %v1111_v0 }
 0x116   : > { %v1278_v1 = vpop.eup %1277  ;;  %1303 = vpow2.f32 %v1114_v30 }
 0x117   : > { %v1280_v8 = vpop.eup %1279  ;;  %v755_v41 = vadd.f32 1.0, %v1278_v1 }
 0x118   : > { %v1282_v5 = vpop.eup %1281 }
 0x119   : > { %v1284_v12 = vpop.eup %1283  ;;  %1305 = vrcp.f32 %v755_v41 }
 0x11a   : > { %v1286_v47 = vpop.eup %1285  ;;  %1307 = vpow2.f32 %v1113_v14 }
 0x11b   : > { %v1288_v26 = vpop.eup %1287  ;;  %v758_v44 = vadd.f32 1.0, %v1286_v47 }
 0x11c   : > { %v1290_v34 = vpop.eup %1289 }
 0x11d   : > { %v1292_v36 = vpop.eup %1291  ;;  %1309 = vrcp.f32 %v758_v44 }
 0x11e   : > { %v1294_v57 = vpop.eup %1293  ;;  %v757_v39 = vadd.f32 1.0, %v1292_v36 }
 0x11f   : > { %v1296_v62 = vpop.eup %1295 }
 0x120   : > { %v1298_v2 = vpop.eup %1297  ;;  %v760_v18 = vadd.f32 1.0, %v1296_v62  ;;  %1311 = vrcp.f32 %v757_v39 }
 0x121   : > { %v1300_v45 = vpop.eup %1299 }
 0x122   : > { %v1302_v49 = vpop.eup %1301  ;;  %1313 = vrcp.f32 %v760_v18 }
 0x123   : > { %v1304_v53 = vpop.eup %1303 }
 0x124   : > { %v762_v58 = vadd.f32 1.0, %v1304_v53 }
 0x126   : > { %v1306_v54 = vpop.eup %1305 }
 0x127   : > { %v1308_v55 = vpop.eup %1307 }
 0x128   : > { %v761_v60 = vadd.f32 1.0, %v1308_v55 }
 0x15b   : > { %v894_v63 = vpop.permute.xlu1 %893 }
 0x15c   : > { %v940_v40 = vmul.f32 %v1276_v61, %v894_v63  ;;  %v1310_v63 = vpop.eup %1309 }
 0x15d   : > { %v892_v4 = vpop.permute.xlu0 %891  ;;  %v1312_v1 = vpop.eup %1311 }
 0x15e   : > { %v956_v3 = vadd.f32 %v940_v40, %v1409_v10  ;;  %v939_v56 = vmul.f32 %v1280_v8, %v892_v4 }
 0x15f   : > { %v898_v6 = vpop.permute.xlu1 %897 }
 0x160   : > { %972 = vst.msk [vmem:[%s1648_s22 + $0x8] sm:$0xff] %vm482_vm1, %v956_v3  ;;  %v955_v16 = vadd.f32 %v939_v56, %v1406_v9  ;;  %v942_v20 = vmul.f32 %v1282_v5, %v898_v6  ;;  %v1314_v3 = vpop.eup %1313 }
 0x161   : > { %v896_v10 = vpop.permute.xlu0 %895 }
 0x162   : > { %971 = vst.msk [vmem:[%s1648_s22] sm:$0xff] %vm482_vm1, %v955_v16  ;;  %v958_v22 = vadd.f32 %v942_v20, %v1424_v13  ;;  %v941_v24 = vmul.f32 %v1284_v12, %v896_v10 }
 0x163   : > { %v902_v32 = vpop.permute.xlu1 %901 }
 0x164   : > { %974 = vst.msk [vmem:[%s1648_s22 + $0x18] sm:$0xff] %vm482_vm1, %v958_v22  ;;  %v957_v9 = vadd.f32 %v941_v24, %v1412_v11  ;;  %v944_v51 = vmul.f32 %v1288_v26, %v902_v32 }
 0x165   : > { %v900_v48 = vpop.permute.xlu0 %899 }
 0x166   : > { %973 = vst.msk [vmem:[%s1648_s22 + $0x10] sm:$0xff] %vm482_vm1, %v957_v9  ;;  %v960_v13 = vadd.f32 %v944_v51, %v1442_v17  ;;  %v943_v52 = vmul.f32 %v1290_v34, %v900_v48 }
 0x167   : > { %v906_v38 = vpop.permute.xlu1 %905 }
 0x168   : > { %976 = vst.msk [vmem:[%s1648_s22 + $0x28] sm:$0xff] %vm482_vm1, %v960_v13  ;;  %v959_v42 = vadd.f32 %v943_v52, %v1430_v15  ;;  %v946_v11 = vmul.f32 %v1294_v57, %v906_v38 }
 0x169   : > { %v904_v43 = vpop.permute.xlu0 %903 }
 0x16a   : > { %975 = vst.msk [vmem:[%s1648_s22 + $0x20] sm:$0xff] %vm482_vm1, %v959_v42  ;;  %v962_v7 = vadd.f32 %v946_v11, %v1460_v21  ;;  %v945_v17 = vmul.f32 %v1298_v2, %v904_v43  ;;  %v759_v21 = vadd.f32 1.0, %v1302_v49 }
 0x16b   : > { %v910_v28 = vpop.permute.xlu1 %909 }
 0x16c   : > { %978 = vst.msk [vmem:[%s1648_s22 + $0x38] sm:$0xff] %vm482_vm1, %v962_v7  ;;  %v961_v50 = vadd.f32 %v945_v17, %v1448_v19  ;;  %v948_v15 = vmul.f32 %v1300_v45, %v910_v28  ;;  %1315 = vrcp.f32 %v759_v21 }
 0x16d   : > { %v908_v59 = vpop.permute.xlu0 %907  ;;  %1317 = vrcp.f32 %v762_v58 }
 0x16e   : > { %977 = vst.msk [vmem:[%s1648_s22 + $0x30] sm:$0xff] %vm482_vm1, %v961_v50  ;;  %v964_v46 = vadd.f32 %v948_v15, %v1478_v25  ;;  %v947_v61 = vmul.f32 %v1306_v54, %v908_v59  ;;  %1319 = vrcp.f32 %v761_v60 }
 0x16f   : > { %v914_v0 = vpop.permute.xlu1 %913 }
 0x170   : > { %980 = vst.msk [vmem:[%s1648_s22 + $0x48] sm:$0xff] %vm482_vm1, %v964_v46  ;;  %v963_v19 = vadd.f32 %v947_v61, %v1466_v23  ;;  %v950_v25 = vmul.f32 %v1310_v63, %v914_v0 }
 0x171   : > { %v912_v8 = vpop.permute.xlu0 %911 }
 0x172   : > { %979 = vst.msk [vmem:[%s1648_s22 + $0x40] sm:$0xff] %vm482_vm1, %v963_v19  ;;  %v966_v40 = vadd.f32 %v950_v25, %v1496_v29  ;;  %v949_v30 = vmul.f32 %v1312_v1, %v912_v8 }
 0x173   : > { %v918_v4 = vpop.permute.xlu1 %917 }
 0x174   : > { %982 = vst.msk [vmem:[%s1648_s22 + $0x58] sm:$0xff] %vm482_vm1, %v966_v40  ;;  %v965_v23 = vadd.f32 %v949_v30, %v1484_v27  ;;  %v952_v56 = vmul.f32 %v1314_v3, %v918_v4 }
 0x175   : > { %v916_v6 = vpop.permute.xlu0 %915 }
 0x176   : > { %981 = vst.msk [vmem:[%s1648_s22 + $0x50] sm:$0xff] %vm482_vm1, %v965_v23  ;;  %v968_v5 = vadd.f32 %v952_v56, %v1514_v33 }
 0x177   : > { %v922_v14 = vpop.permute.xlu1 %921 }
 0x178   : > { %984 = vst.msk [vmem:[%s1648_s22 + $0x68] sm:$0xff] %vm482_vm1, %v968_v5 }
 0x179   : > { %v1316_v41 = vpop.eup %1315  ;;  %v920_v10 = vpop.permute.xlu0 %919 }
 0x17a   : > { %v951_v29 = vmul.f32 %v1316_v41, %v916_v6  ;;  %v1318_v12 = vpop.eup %1317 }
 0x17b   : > { %v954_v20 = vmul.f32 %v1318_v12, %v922_v14  ;;  %v1320_v47 = vpop.eup %1319 }
 0x17c   : > { %v967_v16 = vadd.f32 %v951_v29, %v1502_v31  ;;  %v953_v22 = vmul.f32 %v1320_v47, %v920_v10 }
 0x17d   : > { %v970_v27 = vadd.f32 %v954_v20, %v1532_v37 }
 0x17e   : > { %983 = vst.msk [vmem:[%s1648_s22 + $0x60] sm:$0xff] %vm482_vm1, %v967_v16  ;;  %v969_v33 = vadd.f32 %v953_v22, %v1520_v35 }
 0x17f   : > { %986 = vst.msk [vmem:[%s1648_s22 + $0x78] sm:$0xff] %vm482_vm1, %v970_v27 }
 0x180   : > { %985 = vst.msk [vmem:[%s1648_s22 + $0x70] sm:$0xff] %vm482_vm1, %v969_v33 }
 0x181 PF: > { %s15_s18 = sadd.s32 1, %s1327_s18  }
 0x182   : > { %p12_p4 = scmp.ge.s32.totalorder %s15_s18, 4  }
 0x184   :  { %14 = sbr.rel (!%p12_p4) target bundleno = 1 (0x1), region = 73 }

</bundles_post_ra>
